<compile_context>
chip_gen: v5e
topology: v5e:2x2
jax: 0.10.0
libtpu: 0.0.40
codegen_flags: <defaults>
</compile_context>

<pallas_src>
import functools

import jax
import jax.numpy as jnp
from jax.experimental import pallas as pl
from jax.experimental.pallas import tpu as pltpu

_ACT_DTYPE = jnp.bfloat16        # inter-layer activation dtype (MXU-native)
_VMEM_LIMIT = 32 * 1024 * 1024   # safe scoped-VMEM budget on v5e/v6e/v7x

# Unified matmul tile caps (review: 512-class tiles fit all generations easily;
# working set at tm=512, tk<=1024, tn<=1024 is ~8-12 MiB incl. double buffers).
_TM_CAP = 512
_TK_CAP = 1024
_TN_CAP = 1024


# --------------------------------------------------------------------------
# tiling helpers (all trace-time Python on static ints)
# --------------------------------------------------------------------------
def _round_up(x, m):
    return ((x + m - 1) // m) * m


def _fit_tile(padded_dim, cap, step):
    t = max(step, (min(cap, padded_dim) // step) * step)
    while padded_dim % t != 0:
        t -= step
    return t


@functools.lru_cache(maxsize=None)
def _k_plan(k):
    """Return (kp, tk). K <= cap -> single full-extent K block, zero padding."""
    if k <= _TK_CAP:
        return k, k
    kp = _round_up(k, 128)
    return kp, _fit_tile(kp, _TK_CAP, 128)


def _n_plan(n):
    return _round_up(n, 128)     # lane-dense (>=128 lane) output stores


@functools.lru_cache(maxsize=None)
def _m_plan(m):
    """Return (mp, tm) minimizing zero-pad rows while keeping fat (>=128) tiles."""
    mp16 = _round_up(m, 16)
    if mp16 <= _TM_CAP:
        return mp16, mp16        # single M block, at most 15 pad rows
    best_mp, best_tm, best_waste = None, None, None
    for tm in range(_TM_CAP, 127, -16):
        mp = _round_up(m, tm)
        waste = mp - m
        if best_waste is None or waste < best_waste:
            best_mp, best_tm, best_waste = mp, tm, waste
        if waste == mp16 - m:    # cannot do better than the 16-row floor
            break
    return best_mp, best_tm


# --------------------------------------------------------------------------
# Pallas kernels
# --------------------------------------------------------------------------
def _matmul_bn_kernel(*refs, relu, has_res):
    # in: a (tm,tk) bf16, w (tk,tn) bf16, scale/shift (1,tn) f32, [res (tm,tn)]
    # out: o (tm,tn) bf16; scratch: acc (tm,tn) f32
    if has_res:
        a_ref, w_ref, scale_ref, shift_ref, res_ref, o_ref, acc_ref = refs
    else:
        a_ref, w_ref, scale_ref, shift_ref, o_ref, acc_ref = refs
        res_ref = None
    k = pl.program_id(2)

    @pl.when(k == 0)
    def _():
        acc_ref[...] = jnp.zeros_like(acc_ref)

    acc_ref[...] += jnp.dot(a_ref[...], w_ref[...],
                            preferred_element_type=jnp.float32)

    @pl.when(k == pl.num_programs(2) - 1)
    def _():
        y = acc_ref[...] * scale_ref[...] + shift_ref[...]   # f32 epilogue
        if res_ref is not None:
            y = y + res_ref[...].astype(jnp.float32)          # fused residual
        if relu:
            y = jnp.maximum(y, 0.0)
        o_ref[...] = y.astype(o_ref.dtype)


def _mean_pool_kernel(x_ref, o_ref):
    # x: (B, H*W, tc) -> global average pool (f32) -> (B, tc)
    o_ref[...] = jnp.mean(x_ref[...].astype(jnp.float32), axis=1)


# --------------------------------------------------------------------------
# pallas_call builders (cached per static configuration)
# --------------------------------------------------------------------------
@functools.lru_cache(maxsize=None)
def _matmul_bn_fn(mp, kp, np_, tm, tk, tn, relu, has_res, out_dtype_name):
    kernel = functools.partial(_matmul_bn_kernel, relu=relu, has_res=has_res)
    in_specs = [
        pl.BlockSpec((tm, tk), lambda i, j, k: (i, k)),    # LHS (im2col) bf16
        pl.BlockSpec((tk, tn), lambda i, j, k: (k, j)),    # RHS (weights) bf16
        pl.BlockSpec((1, tn), lambda i, j, k: (0, j)),     # BN scale f32
        pl.BlockSpec((1, tn), lambda i, j, k: (0, j)),     # BN shift f32
    ]
    if has_res:
        in_specs.append(pl.BlockSpec((tm, tn), lambda i, j, k: (i, j)))
    return pl.pallas_call(
        kernel,
        out_shape=jax.ShapeDtypeStruct((mp, np_), jnp.dtype(out_dtype_name)),
        grid_spec=pltpu.PrefetchScalarGridSpec(
            num_scalar_prefetch=0,
            grid=(mp // tm, np_ // tn, kp // tk),
            in_specs=in_specs,
            out_specs=pl.BlockSpec((tm, tn), lambda i, j, k: (i, j)),
            scratch_shapes=[pltpu.VMEM((tm, tn), jnp.float32)],
        ),
        compiler_params=pltpu.CompilerParams(
            dimension_semantics=("parallel", "parallel", "arbitrary"),
            vmem_limit_bytes=_VMEM_LIMIT,
        ),
    )


@functools.lru_cache(maxsize=None)
def _mean_pool_fn(b, hw, c, tc, in_dtype_name):
    del in_dtype_name  # part of the cache key only
    return pl.pallas_call(
        _mean_pool_kernel,
        out_shape=jax.ShapeDtypeStruct((b, c), jnp.float32),
        grid_spec=pltpu.PrefetchScalarGridSpec(
            num_scalar_prefetch=0,
            grid=(c // tc,),
            in_specs=[pl.BlockSpec((b, hw, tc), lambda cb: (0, 0, cb))],
            out_specs=pl.BlockSpec((b, tc), lambda cb: (0, cb)),
        ),
        compiler_params=pltpu.CompilerParams(
            dimension_semantics=("parallel",),
            vmem_limit_bytes=_VMEM_LIMIT,
        ),
    )


# --------------------------------------------------------------------------
# wrappers: tiled matmul+BN(+residual), im2col, pooling
# --------------------------------------------------------------------------
def _matmul_bn(a, w_pad, scale_pad, shift_pad, *, n, relu, residual, out_dtype):
    """a: (m, k) activations; w/scale/shift already padded to (kp, np_) at init."""
    m, k = a.shape
    kp, np_ = w_pad.shape
    kp_expected, tk = _k_plan(k)
    assert kp_expected == kp and np_ == _n_plan(n), (k, kp, n, np_)
    mp, tm = _m_plan(m)
    tn = _fit_tile(np_, _TN_CAP, 128)
    # v7x (2 TensorCores): make sure at least 2 parallel blocks exist.
    if (mp // tm) * (np_ // tn) == 1 and np_ % 256 == 0:
        tn = np_ // 2

    a = a.astype(jnp.bfloat16)
    if (mp, kp) != (m, k):
        a = jnp.pad(a, ((0, mp - m), (0, kp - k)))   # tiny (<=15 rows) in ResNet

    args = [a, w_pad, scale_pad, shift_pad]
    if residual is not None:
        r = residual.astype(jnp.bfloat16)
        if (mp, np_) != (m, n):
            r = jnp.pad(r, ((0, mp - m), (0, np_ - n)))
        args.append(r)

    fn = _matmul_bn_fn(mp, kp, np_, tm, tk, tn, bool(relu),
                       residual is not None, jnp.dtype(out_dtype).name)
    out = fn(*args)
    if (mp, np_) != (m, n):
        out = out[:m, :n]
    return out


def _im2col(x, kh, kw, stride, pad):
    # x: (B,H,W,C) NHWC -> (B*Ho*Wo, kh*kw*C), patch row order = (ki, kj, c)
    b, h, w, c = x.shape
    if pad > 0:
        x = jnp.pad(x, ((0, 0), (pad, pad), (pad, pad), (0, 0)))
    ho = (h + 2 * pad - kh) // stride + 1
    wo = (w + 2 * pad - kw) // stride + 1
    cols = []
    for i in range(kh):
        for j in range(kw):
            patch = jax.lax.slice(
                x,
                (0, i, j, 0),
                (b, i + (ho - 1) * stride + 1, j + (wo - 1) * stride + 1, c),
                (1, stride, stride, 1),
            )
            cols.append(patch)
    patches = jnp.stack(cols, axis=3)          # (B, Ho, Wo, kh*kw, C)
    return patches.reshape(b * ho * wo, kh * kw * c), ho, wo


def conv2d_bn(x, p, *, cout, kh, kw, stride=1, pad=0, relu=True, residual=None):
    """x: (B,H,W,Cin) NHWC; p: dict with pre-padded w2d/scale/shift."""
    b, _, _, cin = x.shape
    if kh == 1 and kw == 1 and pad == 0:
        if stride > 1:
            x = x[:, ::stride, ::stride, :]
        ho, wo = x.shape[1], x.shape[2]
        a2d = x.reshape(b * ho * wo, cin)
    else:
        a2d, ho, wo = _im2col(x, kh, kw, stride, pad)
    r2d = None if residual is None else residual.reshape(b * ho * wo, cout)
    out2d = _matmul_bn(a2d, p["w2d"], p["scale"], p["shift"], n=cout,
                       relu=relu, residual=r2d, out_dtype=_ACT_DTYPE)
    return out2d.reshape(b, ho, wo, cout)


def maxpool2d(x, k=3, stride=2, pad=1):
    # Pairwise max tree over the 9 strided taps; fuses in XLA inside the stem
    # jit (per perf review: avoids the 9x HBM materialization of the old
    # Pallas stack-reduce kernel on the largest activation map).
    b, h, w, c = x.shape
    neg = jnp.finfo(x.dtype).min
    xp = jnp.pad(x, ((0, 0), (pad, pad), (pad, pad), (0, 0)), constant_values=neg)
    ho = (h + 2 * pad - k) // stride + 1
    wo = (w + 2 * pad - k) // stride + 1
    out = None
    for i in range(k):
        for j in range(k):
            tap = jax.lax.slice(
                xp,
                (0, i, j, 0),
                (b, i + (ho - 1) * stride + 1, j + (wo - 1) * stride + 1, c),
                (1, stride, stride, 1),
            )
            out = tap if out is None else jnp.maximum(out, tap)
    return out


def global_avgpool_flatten(x):
    # AdaptiveAvgPool2d((1,1)) followed by .view(B, -1); returns f32 (B, C)
    b, h, w, c = x.shape
    tc = 512 if c % 512 == 0 else (128 if c % 128 == 0 else c)
    fn = _mean_pool_fn(b, h * w, c, tc, str(x.dtype))
    return fn(x.reshape(b, h * w, c))


# --------------------------------------------------------------------------
# Architecture + deterministic synthetic parameter initialization
# --------------------------------------------------------------------------
_BLOCKS = {"resnet101": (3, 4, 23, 3), "resnet152": (3, 8, 36, 3)}


def _arch(feature):
    """Static per-block config: (in_ch, planes, stride, has_downsample)."""
    arch = []
    in_ch = 64
    for li, (planes, nblocks) in enumerate(zip((64, 128, 256, 512),
                                               _BLOCKS[feature])):
        stage_stride = 1 if li == 0 else 2
        blocks = []
        for bi in range(nblocks):
            s = stage_stride if bi == 0 else 1
            has_ds = bi == 0 and (s != 1 or in_ch != planes * 4)
            blocks.append((in_ch, planes, s, has_ds))
            in_ch = planes * 4
        arch.append(blocks)
    return arch


def _init_conv_bn(key, cin, cout, k):
    kw_key, g_key, b_key, m_key, v_key = jax.random.split(key, 5)
    fan_in = cin * k * k
    w = jax.random.normal(kw_key, (cout, cin, k, k), jnp.float32) * jnp.sqrt(2.0 / fan_in)
    gamma = 1.0 + 0.1 * jax.random.normal(g_key, (cout,), jnp.float32)
    beta = 0.01 * jax.random.normal(b_key, (cout,), jnp.float32)
    mean = 0.01 * jax.random.normal(m_key, (cout,), jnp.float32)
    var = 1.0 + 0.1 * jnp.abs(jax.random.normal(v_key, (cout,), jnp.float32))
    eps = 1e-5
    scale = gamma / jnp.sqrt(var + eps)    # fold eval-mode BN into scale/shift
    shift = beta - mean * scale

    # pre-pack into the (ki, kj, cin)-major matmul RHS, then pre-pad + pre-cast
    # to the tile-padded shapes ONCE here (perf review: no per-forward pads).
    K = k * k * cin
    kp, _tk = _k_plan(K)
    np_ = _n_plan(cout)
    w2d = jnp.transpose(w, (2, 3, 1, 0)).reshape(K, cout)
    w2d = jnp.pad(w2d, ((0, kp - K), (0, np_ - cout))).astype(jnp.bfloat16)
    sc = jnp.pad(scale.astype(jnp.float32).reshape(1, cout), ((0, 0), (0, np_ - cout)))
    sh = jnp.pad(shift.astype(jnp.float32).reshape(1, cout), ((0, 0), (0, np_ - cout)))
    return {"w2d": w2d, "scale": sc, "shift": sh}


def init_resnet_feature_params(feature="resnet101", seed=0):
    root = jax.random.PRNGKey(seed)
    ctr = [0]

    def next_key():
        ctr[0] += 1
        return jax.random.fold_in(root, ctr[0])

    params = {"conv1": _init_conv_bn(next_key(), 3, 64, 7)}
    for li, blocks in enumerate(_arch(feature)):
        blk_params = []
        for (in_ch, planes, _s, has_ds) in blocks:
            blk = {
                "conv1": _init_conv_bn(next_key(), in_ch, planes, 1),
                "conv2": _init_conv_bn(next_key(), planes, planes, 3),
                "conv3": _init_conv_bn(next_key(), planes, planes * 4, 1),
            }
            if has_ds:
                blk["downsample"] = _init_conv_bn(next_key(), in_ch, planes * 4, 1)
            blk_params.append(blk)
        params[f"layer{li + 1}"] = blk_params
    return params


# --------------------------------------------------------------------------
# Forward pass (matches ResNetFeature.forward: conv5 -> pool5 -> view)
# --------------------------------------------------------------------------
@jax.jit
def _stem(x_nchw, p):
    x = jnp.transpose(x_nchw, (0, 2, 3, 1)).astype(_ACT_DTYPE)   # NCHW -> NHWC
    x = conv2d_bn(x, p, cout=64, kh=7, kw=7, stride=2, pad=3, relu=True)
    return maxpool2d(x, k=3, stride=2, pad=1)


@functools.partial(jax.jit, static_argnames=("planes", "stride", "has_downsample"))
def _bottleneck(x, p, *, planes, stride, has_downsample):
    out = conv2d_bn(x, p["conv1"], cout=planes, kh=1, kw=1, relu=True)
    out = conv2d_bn(out, p["conv2"], cout=planes, kh=3, kw=3, stride=stride,
                    pad=1, relu=True)
    if has_downsample:
        identity = conv2d_bn(x, p["downsample"], cout=planes * 4, kh=1, kw=1,
                             stride=stride, relu=False)
    else:
        identity = x
    # conv3 + BN + residual add + ReLU fused into one matmul epilogue
    return conv2d_bn(out, p["conv3"], cout=planes * 4, kh=1, kw=1, relu=True,
                     residual=identity)


@jax.jit
def _head(x):
    return global_avgpool_flatten(x)   # pool5.view(B, -1), f32


def resnet_feature_forward(x_nchw, params, feature="resnet101"):
    """x_nchw: (B, 3, H, W) float32 (PyTorch NCHW). Returns (B, 2048) float32."""
    x = _stem(x_nchw, params["conv1"])
    for li, blocks in enumerate(_arch(feature)):
        for bi, (_in_ch, planes, stride, has_ds) in enumerate(blocks):
            x = _bottleneck(x, params[f"layer{li + 1}"][bi],
                            planes=planes, stride=stride, has_downsample=has_ds)
    return _head(x)


# --------------------------------------------------------------------------
if __name__ == "__main__":
    B, H, W = 2, 64, 64  # small spatial size (>=32) so all 5 downsamples apply
    x = jax.random.normal(jax.random.PRNGKey(0), (B, 3, H, W), jnp.float32)

    params = init_resnet_feature_params("resnet101", seed=0)
    out = resnet_feature_forward(x, params, feature="resnet101")
    out = jax.block_until_ready(out)

    assert out.shape == (B, 2048), out.shape
    assert out.dtype == jnp.float32
    assert bool(jnp.all(jnp.isfinite(out)))
    print("KERNEL_OK")
</pallas_src>

<mosaic_0001>
module attributes {stable_mosaic.version = 11 : i64} {
  func.func @_matmul_bn_kernel(%arg0: i32, %arg1: i32, %arg2: i32, %arg3: memref<512x147xbf16, #tpu.memory_space<vmem>>, %arg4: memref<147x128xbf16, #tpu.memory_space<vmem>>, %arg5: memref<1x128xf32, #tpu.memory_space<vmem>>, %arg6: memref<1x128xf32, #tpu.memory_space<vmem>>, %arg7: memref<512x128xbf16, #tpu.memory_space<vmem>>, %arg8: memref<512x128xf32, #tpu.memory_space<vmem>>) attributes {dimension_semantics = [#tpu.dimension_semantics<parallel>, #tpu.dimension_semantics<parallel>, #tpu.dimension_semantics<arbitrary>], iteration_bounds = array<i64: 4, 1, 1>, scalar_prefetch = 0 : i64, scratch_operands = 1 : i64, tpu.core_type = #tpu.core_type<tc>, window_params = [{transform_indices = @transform_0, window_bounds = array<i64: 512, 147>}, {transform_indices = @transform_1, window_bounds = array<i64: 147, 128>}, {transform_indices = @transform_2, window_bounds = array<i64: 1, 128>}, {transform_indices = @transform_3, window_bounds = array<i64: 1, 128>}, {transform_indices = @transform_4, window_bounds = array<i64: 512, 128>}]} {
    %c0_i32 = arith.constant 0 : i32
    %0 = arith.cmpi eq, %arg2, %c0_i32 : i32
    %1 = arith.extui %0 : i1 to i32
    %c0_i32_0 = arith.constant 0 : i32
    %2 = arith.cmpi ne, %1, %c0_i32_0 : i32
    scf.if %2 {
      %cst_10 = arith.constant 0.000000e+00 : f32
      %12 = vector.broadcast %cst_10 : f32 to vector<512x128xf32>
      %c0_11 = arith.constant 0 : index
      %c0_12 = arith.constant 0 : index
      %13 = vector.load %arg8[%c0_11, %c0_12] : memref<512x128xf32, #tpu.memory_space<vmem>>, vector<512x128xf32>
      tpu.vector_store %arg8[%c0_11, %c0_12], %12 {strides = array<i32>} : memref<512x128xf32, #tpu.memory_space<vmem>>, vector<512x128xf32>,
    } else {
    }
    %c0 = arith.constant 0 : index
    %c0_1 = arith.constant 0 : index
    %3 = vector.load %arg8[%c0, %c0_1] : memref<512x128xf32, #tpu.memory_space<vmem>>, vector<512x128xf32>
    %c0_2 = arith.constant 0 : index
    %c0_3 = arith.constant 0 : index
    %4 = vector.load %arg3[%c0_2, %c0_3] : memref<512x147xbf16, #tpu.memory_space<vmem>>, vector<512x147xbf16>
    %c0_4 = arith.constant 0 : index
    %c0_5 = arith.constant 0 : index
    %5 = vector.load %arg4[%c0_4, %c0_5] : memref<147x128xbf16, #tpu.memory_space<vmem>>, vector<147x128xbf16>
    %cst = arith.constant dense<0.000000e+00> : vector<512x128xf32>
    %6 = tpu.matmul %4, %5, %cst {dimension_numbers = #tpu.dot_dimension_numbers<[1], [0], [0], [1], [0, 0, 1, 1], [], []>} : vector<512x147xbf16>, vector<147x128xbf16>, vector<512x128xf32> -> vector<512x128xf32>
    %7 = arith.addf %3, %6 : vector<512x128xf32>
    %c0_6 = arith.constant 0 : index
    %c0_7 = arith.constant 0 : index
    %8 = vector.load %arg8[%c0_6, %c0_7] : memref<512x128xf32, #tpu.memory_space<vmem>>, vector<512x128xf32>
    tpu.vector_store %arg8[%c0_6, %c0_7], %7 {strides = array<i32>} : memref<512x128xf32, #tpu.memory_space<vmem>>, vector<512x128xf32>,
    %c0_i32_8 = arith.constant 0 : i32
    %9 = arith.cmpi eq, %arg2, %c0_i32_8 : i32
    %10 = arith.extui %9 : i1 to i32
    %c0_i32_9 = arith.constant 0 : i32
    %11 = arith.cmpi ne, %10, %c0_i32_9 : i32
    scf.if %11 {
      %c0_10 = arith.constant 0 : index
      %c0_11 = arith.constant 0 : index
      %12 = vector.load %arg8[%c0_10, %c0_11] : memref<512x128xf32, #tpu.memory_space<vmem>>, vector<512x128xf32>
      %c0_12 = arith.constant 0 : index
      %c0_13 = arith.constant 0 : index
      %13 = vector.load %arg5[%c0_12, %c0_13] : memref<1x128xf32, #tpu.memory_space<vmem>>, vector<1x128xf32>
      %14 = vector.broadcast %13 : vector<1x128xf32> to vector<512x128xf32>
      %15 = arith.mulf %12, %14 : vector<512x128xf32>
      %c0_14 = arith.constant 0 : index
      %c0_15 = arith.constant 0 : index
      %16 = vector.load %arg6[%c0_14, %c0_15] : memref<1x128xf32, #tpu.memory_space<vmem>>, vector<1x128xf32>
      %17 = vector.broadcast %16 : vector<1x128xf32> to vector<512x128xf32>
      %18 = arith.addf %15, %17 : vector<512x128xf32>
      %cst_16 = arith.constant 0.000000e+00 : f32
      %19 = vector.broadcast %cst_16 : f32 to vector<512x128xf32>
      %20 = arith.maximumf %18, %19 : vector<512x128xf32>
      %21 = arith.truncf %20 : vector<512x128xf32> to vector<512x128xbf16>
      %c0_17 = arith.constant 0 : index
      %c0_18 = arith.constant 0 : index
      %22 = vector.load %arg7[%c0_17, %c0_18] : memref<512x128xbf16, #tpu.memory_space<vmem>>, vector<512x128xbf16>
      tpu.vector_store %arg7[%c0_17, %c0_18], %21 {strides = array<i32>} : memref<512x128xbf16, #tpu.memory_space<vmem>>, vector<512x128xbf16>,
    } else {
    }
    return
  }
  func.func @transform_0(%arg0: i32, %arg1: i32, %arg2: i32) -> (i32, i32) {
    %c0_i32 = arith.constant 0 : i32
    return %arg0, %arg2 : i32, i32
  }
  func.func @transform_1(%arg0: i32, %arg1: i32, %arg2: i32) -> (i32, i32) {
    %c0_i32 = arith.constant 0 : i32
    return %arg2, %arg1 : i32, i32
  }
  func.func @transform_2(%arg0: i32, %arg1: i32, %arg2: i32) -> (i32, i32) {
    %c0_i32 = arith.constant 0 : i32
    %c0_i32_0 = arith.constant 0 : i32
    return %c0_i32, %arg1 : i32, i32
  }
  func.func @transform_3(%arg0: i32, %arg1: i32, %arg2: i32) -> (i32, i32) {
    %c0_i32 = arith.constant 0 : i32
    %c0_i32_0 = arith.constant 0 : i32
    return %c0_i32, %arg1 : i32, i32
  }
  func.func @transform_4(%arg0: i32, %arg1: i32, %arg2: i32) -> (i32, i32) {
    %c0_i32 = arith.constant 0 : i32
    return %arg0, %arg1 : i32, i32
  }
}

</mosaic_0001>

<bundles_post_ra>
// kernel: _stem.1
= control target key start
LH: loop header
LB: loop body
LE: loop exit
PB: predicated region body
PF: predicated region fallthrough
CT: control target
= control target key end

     0   :  { %s2653_s15 = smov 0   ;;  %s2655_s16 = smov 0   ;;  %s3099_s0 = inlined_call_operand.vmem [shape: bf16[2048,147], index: 0, kind: input, shape index: {}]   ;;  %s3100_s1 = inlined_call_operand.vmem [shape: bf16[147,128], index: 1, kind: input, shape index: {}]   ;;  %s3101_s2 = inlined_call_operand.vmem [shape: f32[1,128], index: 2, kind: input, shape index: {}]   ;;  %s3102_s3 = inlined_call_operand.vmem [shape: f32[1,128], index: 3, kind: input, shape index: {}]   ;;  %s3103_s4 = inlined_call_operand.vmem [shape: bf16[2048,128], index: 4, kind: output, shape index: {}]  }
   0x1   :  { %s2657_s17 = smov 0  }
   0x2 LB: > { %s33_s18 = sadd.s32 1, %s2621_s16  ;;  %p1967_p0 = scmp.ge.s32.totalorder %s2625_s17, 1  ;;  %s2625_s17 = sphi %s2657_s17, %s14_s17   ;;  %s2621_s16 = sphi %s2655_s16, %s3105_s16   ;;  %s2617_s15 = sphi %s2653_s15, %s3104_s15  }
   0x3   : > { %p35_p1 = scmp.ge.s32.totalorder %s33_s18, 4  ;;  %p224_p2 = scmp.lt.s32.totalorder %s2625_s17, 5 }
   0x5   : > { %s3107_s18 = smov (%p35_p1, %s33_s18), 0  ;;  %p225_p3 = pnand %p1967_p0, %p224_p2 }
   0x6   : > { %s1968_s23 = sshll.u32 (!%p225_p3), %s2617_s15, 6 }
   0x7   : > { %228 = sbr.rel (%p225_p3) target bundleno = 435 (0x1b3), region = 36  ;;  %p274_p4 = scmp.lt.s32.totalorder (!%p225_p3), %s1968_s23, 255 }
   0xc   : > { %v2371_v0 = vld [vmem:[%s3100_s1 + $0x38] sm:$0xff]  ;;  %v523_v1 = vld [vmem:[%s3100_s1 + $0x48] sm:$0x3]  ;;  %vm966_vm0 = vcmask 1040384   ;;  %vm967_vm1 = vcmask 1041408   ;;  %v2370_v3 = vld [vmem:[%s3100_s1 + $0x30] sm:$0xff] }
   0xd   : > { %v849_v2 = vunpack.c.l.b16 %v523_v1  ;;  %973 = vmatpush.bf16.msra.mxu0 %v2371_v0  ;;  %2564 = vmatpush.bf16.msra.mxu2 %v2371_v0  ;;  %v2627_v4 = vmov 65535   ;;  %s3109_s23 = smov (!%p274_p4, %s1968_s23), 255  ;;  %v2369_v9 = vld [vmem:[%s3100_s1 + $0x28] sm:$0xff]  ;;  %v2372_v10 = vld [vmem:[%s3100_s1 + $0x40] sm:$0xff]  ;;  %vm869_vm2 = vcmask 154624   ;;  %v2367_v18 = vld [vmem:[%s3100_s1 + $0x18] sm:$0xff] }
   0xe   : > { %v968_v5 = vsel %vm966_vm0, 4294967295, %v2627_v4  ;;  %s2299_s28 = sshll.u32 %s3109_s23, 3  ;;  %v2368_v14 = vld [vmem:[%s3100_s1 + $0x20] sm:$0xff]  ;;  %v2366_v19 = vld [vmem:[%s3100_s1 + $0x10] sm:$0xff]  ;;  %v2365_v20 = vld [vmem:[%s3100_s1 + $0x8] sm:$0xff]  ;;  %s1972_s26 = sshll.u32 %s3109_s23, 2 }
   0xf   : > { %v859_v6 = vpack.c.b16 %v849_v2, %v849_v2  ;;  %v969_v7 = vsel %vm967_vm1, %v968_v5, 0  ;;  %s2692_s7 = scalar_lea.vmem %s3099_s0, %s2299_s28  ;;  %v2364_v26 = vld [vmem:[%s3100_s1] sm:$0xff]  ;;  %s2843_s29 = scalar_lea.vmem %s3103_s4, %s1972_s26 }
  0x10   : > { %v2300_v11 = vld [vmem:[%s2692_s7 + $0x4] sm:$0xf]  ;;  %v1977_v12 = vld [vmem:[%s2692_s7 + $0x8] sm:$0xf0]  ;;  %v2334_v15 = vld [vmem:[%s2692_s7 + $0x114] sm:$0xf] }
  0x11   : > { %v971_v8 = vand.u32 %v969_v7, %v859_v6  ;;  %974 = vmatpush.bf16.msra.mxu0 %v2370_v3  ;;  %2565 = vmatpush.bf16.msra.mxu2 %v2370_v3  ;;  %v1980_v13 = vor.u32 %v2300_v11, %v1977_v12  ;;  %v2113_v16 = vld [vmem:[%s2692_s7 + $0x118] sm:$0xf0]  ;;  %v2302_v21 = vld [vmem:[%s2692_s7 + $0x14] sm:$0xf]  ;;  %v2336_v23 = vld [vmem:[%s2692_s7 + $0x124] sm:$0xf] }
  0x12   : > { %v2116_v17 = vor.u32 %v2334_v15, %v2113_v16  ;;  %v1985_v22 = vld [vmem:[%s2692_s7 + $0x18] sm:$0xf0]  ;;  %v2121_v24 = vld [vmem:[%s2692_s7 + $0x128] sm:$0xf0]  ;;  %v1975_v27 = vld [vmem:[%s2692_s7] sm:$0xf] }
  0x13   : > { %1148 = vmatpush.bf16.msra.mxu1 %v971_v8  ;;  %2572 = vmatpush.bf16.msra.mxu3 %v971_v8  ;;  %v1988_v25 = vor.u32 %v2302_v21, %v1985_v22  ;;  %v2301_v28 = vld [vmem:[%s2692_s7 + $0x4] sm:$0xf0]  ;;  %v2103_v29 = vld [vmem:[%s2692_s7 + $0x100] sm:$0xf]  ;;  %v2124_v31 = vor.u32 %v2336_v23, %v2121_v24  ;;  %v2304_v34 = vld [vmem:[%s2692_s7 + $0x24] sm:$0xf] }
  0x14   : > { %v2333_v30 = vld [vmem:[%s2692_s7 + $0x104] sm:$0xf0]  ;;  %v1976_v32 = vor.u32 %v2301_v28, %v1975_v27  ;;  %v1993_v35 = vld [vmem:[%s2692_s7 + $0x28] sm:$0xf0]  ;;  %v2338_v36 = vld [vmem:[%s2692_s7 + $0x134] sm:$0xf] }
  0x15   : > { %975 = vmatpush.bf16.msra.mxu0 %v2369_v9  ;;  %2566 = vmatpush.bf16.msra.mxu2 %v2369_v9  ;;  %v2104_v33 = vor.u32 %v2333_v30, %v2103_v29  ;;  %v2129_v37 = vld [vmem:[%s2692_s7 + $0x138] sm:$0xf0]  ;;  %v1996_v38 = vor.u32 %v2304_v34, %v1993_v35  ;;  %v1983_v39 = vld [vmem:[%s2692_s7 + $0x10] sm:$0xf]  ;;  %v2303_v40 = vld [vmem:[%s2692_s7 + $0x14] sm:$0xf0] }
  0x16   : > { %v2111_v41 = vld [vmem:[%s2692_s7 + $0x110] sm:$0xf]  ;;  %v2335_v42 = vld [vmem:[%s2692_s7 + $0x114] sm:$0xf0]  ;;  %v2132_v43 = vor.u32 %v2338_v36, %v2129_v37  ;;  %v1984_v44 = vor.u32 %v2303_v40, %v1983_v39  ;;  %v2306_v46 = vld [vmem:[%s2692_s7 + $0x34] sm:$0xf] }
  0x17   : > { %1149 = vmatpush.bf16.msra.mxu1 %v2372_v10  ;;  %2573 = vmatpush.bf16.msra.mxu3 %v2372_v10  ;;  %v2112_v45 = vor.u32 %v2335_v42, %v2111_v41  ;;  %v2001_v47 = vld [vmem:[%s2692_s7 + $0x38] sm:$0xf0]  ;;  %v2340_v48 = vld [vmem:[%s2692_s7 + $0x144] sm:$0xf]  ;;  %v2137_v49 = vld [vmem:[%s2692_s7 + $0x148] sm:$0xf0] }
  0x18   : > { %v2004_v50 = vor.u32 %v2306_v46, %v2001_v47  ;;  %v1991_v51 = vld [vmem:[%s2692_s7 + $0x20] sm:$0xf]  ;;  %v2305_v52 = vld [vmem:[%s2692_s7 + $0x24] sm:$0xf0]  ;;  %v2140_v55 = vor.u32 %v2340_v48, %v2137_v49  ;;  %v2308_v58 = vld [vmem:[%s2692_s7 + $0x44] sm:$0xf] }
  0x19   : > { %976 = vmatpush.bf16.msra.mxu0 %v2368_v14  ;;  %2567 = vmatpush.bf16.msra.mxu2 %v2368_v14  ;;  %v2119_v53 = vld [vmem:[%s2692_s7 + $0x120] sm:$0xf]  ;;  %v2337_v54 = vld [vmem:[%s2692_s7 + $0x124] sm:$0xf0]  ;;  %v1992_v56 = vor.u32 %v2305_v52, %v1991_v51  ;;  %v2009_v59 = vld [vmem:[%s2692_s7 + $0x48] sm:$0xf0] }
  0x1a   : > { %2265 = vmatmul.msk.bf16.vlgmr.msra.gmra.mxu1 %vm869_vm2, %v1980_v13  ;;  %2282 = vmatmul.msk.bf16.vlgmr.msra.gmra.mxu3 %vm869_vm2, %v2116_v17  ;;  %v2120_v57 = vor.u32 %v2337_v54, %v2119_v53  ;;  %v2342_v60 = vld [vmem:[%s2692_s7 + $0x154] sm:$0xf]  ;;  %v2145_v61 = vld [vmem:[%s2692_s7 + $0x158] sm:$0xf0]  ;;  %v2012_v62 = vor.u32 %v2308_v58, %v2009_v59  ;;  %v1999_v63 = vld [vmem:[%s2692_s7 + $0x30] sm:$0xf] }
  0x1b   : > { %v2307_v0 = vld [vmem:[%s2692_s7 + $0x34] sm:$0xf0]  ;;  %v2127_v1 = vld [vmem:[%s2692_s7 + $0x130] sm:$0xf]  ;;  %v2148_v3 = vor.u32 %v2342_v60, %v2145_v61  ;;  %v2310_v6 = vld [vmem:[%s2692_s7 + $0x54] sm:$0xf] }
  0x1c   : > { %v2339_v2 = vld [vmem:[%s2692_s7 + $0x134] sm:$0xf0]  ;;  %v2000_v4 = vor.u32 %v2307_v0, %v1999_v63  ;;  %v2017_v7 = vld [vmem:[%s2692_s7 + $0x58] sm:$0xf0]  ;;  %v2344_v8 = vld [vmem:[%s2692_s7 + $0x164] sm:$0xf] }
  0x1d   : > { %977 = vmatpush.bf16.msra.mxu0 %v2367_v18  ;;  %2568 = vmatpush.bf16.msra.mxu2 %v2367_v18  ;;  %v2128_v5 = vor.u32 %v2339_v2, %v2127_v1  ;;  %v2153_v9 = vld [vmem:[%s2692_s7 + $0x168] sm:$0xf0]  ;;  %v2020_v10 = vor.u32 %v2310_v6, %v2017_v7  ;;  %v2007_v11 = vld [vmem:[%s2692_s7 + $0x40] sm:$0xf]  ;;  %v2309_v12 = vld [vmem:[%s2692_s7 + $0x44] sm:$0xf0] }
  0x1e   : > { %v2135_v13 = vld [vmem:[%s2692_s7 + $0x140] sm:$0xf]  ;;  %v2341_v14 = vld [vmem:[%s2692_s7 + $0x144] sm:$0xf0]  ;;  %v2156_v15 = vor.u32 %v2344_v8, %v2153_v9  ;;  %v2008_v16 = vor.u32 %v2309_v12, %v2007_v11  ;;  %v2312_v18 = vld [vmem:[%s2692_s7 + $0x64] sm:$0xf] }
  0x1f   : > { %v2136_v17 = vor.u32 %v2341_v14, %v2135_v13  ;;  %v2161_v21 = vld [vmem:[%s2692_s7 + $0x178] sm:$0xf0]  ;;  %v2015_v23 = vld [vmem:[%s2692_s7 + $0x50] sm:$0xf]  ;;  %v2311_v24 = vld [vmem:[%s2692_s7 + $0x54] sm:$0xf0] }
  0x20   : > { %v2016_v28 = vor.u32 %v2311_v24, %v2015_v23  ;;  %v2314_v30 = vld [vmem:[%s2692_s7 + $0x74] sm:$0xf]  ;;  %v2023_v35 = vld [vmem:[%s2692_s7 + $0x60] sm:$0xf]  ;;  %v2313_v36 = vld [vmem:[%s2692_s7 + $0x64] sm:$0xf0] }
  0x21   : > { %978 = vmatpush.bf16.msra.mxu0 %v2366_v19  ;;  %2569 = vmatpush.bf16.msra.mxu2 %v2366_v19  ;;  %v2025_v19 = vld [vmem:[%s2692_s7 + $0x68] sm:$0xf0]  ;;  %v2151_v37 = vld [vmem:[%s2692_s7 + $0x160] sm:$0xf]  ;;  %v2024_v40 = vor.u32 %v2313_v36, %v2023_v35  ;;  %v2316_v42 = vld [vmem:[%s2692_s7 + $0x84] sm:$0xf] }
  0x22   : > { %v2028_v22 = vor.u32 %v2312_v18, %v2025_v19  ;;  %v2031_v47 = vld [vmem:[%s2692_s7 + $0x70] sm:$0xf]  ;;  %v2315_v48 = vld [vmem:[%s2692_s7 + $0x74] sm:$0xf0]  ;;  %v2049_v58 = vld [vmem:[%s2692_s7 + $0x98] sm:$0xf0] }
  0x23   : > { %v2347_v51 = vld [vmem:[%s2692_s7 + $0x174] sm:$0xf0]  ;;  %v2032_v53 = vor.u32 %v2315_v48, %v2031_v47  ;;  %v2352_v59 = vld [vmem:[%s2692_s7 + $0x1a4] sm:$0xf]  ;;  %v2185_v60 = vld [vmem:[%s2692_s7 + $0x1a8] sm:$0xf0] }
  0x24   : > { %v2317_v63 = vld [vmem:[%s2692_s7 + $0x84] sm:$0xf0]  ;;  %v2167_v2 = vld [vmem:[%s2692_s7 + $0x180] sm:$0xf]  ;;  %v2057_v18 = vld [vmem:[%s2692_s7 + $0xa8] sm:$0xf0] }
  0x25   : > { %979 = vmatpush.bf16.msra.mxu0 %v2365_v20  ;;  %2570 = vmatpush.bf16.msra.mxu2 %v2365_v20  ;;  %v2346_v20 = vld [vmem:[%s2692_s7 + $0x174] sm:$0xf]  ;;  %v2812_v9 = vld [vmem:[%s3101_s2] ss:$0 sm:$0xff]  ;;  %v2047_v24 = vld [vmem:[%s2692_s7 + $0x90] sm:$0xf] }
  0x26   : > { %v2164_v27 = vor.u32 %v2346_v20, %v2161_v21  ;;  %v2820_v13 = vld [vmem:[%s3102_s3] ss:$0 sm:$0xff]  ;;  %v2354_v19 = vld [vmem:[%s2692_s7 + $0x1b4] sm:$0xf]  ;;  %v2193_v20 = vld [vmem:[%s2692_s7 + $0x1b8] sm:$0xf0] }
  0x27   : > { %v2065_v47 = vld [vmem:[%s2692_s7 + $0xb8] sm:$0xf0] }
  0x29   : > { %980 = vmatpush.bf16.msra.mxu0 %v2364_v26  ;;  %2571 = vmatpush.bf16.msra.mxu2 %v2364_v26  ;;  %v2343_v26 = vld [vmem:[%s2692_s7 + $0x154] sm:$0xf0] }
  0x2a   : > { %2266 = vmatmul.msk.bf16.gmra.mxu1 %vm869_vm2, %v1988_v25  ;;  %2283 = vmatmul.msk.bf16.gmra.mxu3 %vm869_vm2, %v2124_v31  ;;  %v2143_v25 = vld [vmem:[%s2692_s7 + $0x150] sm:$0xf]  ;;  %v2033_v31 = vld [vmem:[%s2692_s7 + $0x78] sm:$0xf0] }
  0x2b   : > { %v2144_v29 = vor.u32 %v2343_v26, %v2143_v25  ;;  %v2036_v34 = vor.u32 %v2314_v30, %v2033_v31  ;;  %v2319_v25 = vld [vmem:[%s2692_s7 + $0x94] sm:$0xf0]  ;;  %v2196_v31 = vor.u32 %v2354_v19, %v2193_v20 }
  0x2c   : > { %981 = vmatmul.bf16.vlgmr.msra.gmra.mxu0 %v1976_v32  ;;  %1061 = vmatmul.bf16.vlgmr.msra.gmra.mxu2 %v2104_v33  ;;  %v2348_v32 = vld [vmem:[%s2692_s7 + $0x184] sm:$0xf]  ;;  %v2169_v33 = vld [vmem:[%s2692_s7 + $0x188] sm:$0xf0]  ;;  %v2351_v30 = vld [vmem:[%s2692_s7 + $0x194] sm:$0xf0]  ;;  %v2048_v35 = vor.u32 %v2319_v25, %v2047_v24 }
  0x2d   : > { %v2172_v39 = vor.u32 %v2348_v32, %v2169_v33  ;;  %v2324_v24 = vld [vmem:[%s2692_s7 + $0xc4] sm:$0xf]  ;;  %v2073_v25 = vld [vmem:[%s2692_s7 + $0xc8] sm:$0xf0] }
  0x3a   : > { %2267 = vmatmul.msk.bf16.gmra.mxu1 %vm869_vm2, %v1996_v38  ;;  %2284 = vmatmul.msk.bf16.gmra.mxu3 %vm869_vm2, %v2132_v43  ;;  %v2345_v38 = vld [vmem:[%s2692_s7 + $0x164] sm:$0xf0]  ;;  %v2041_v43 = vld [vmem:[%s2692_s7 + $0x88] sm:$0xf0] }
  0x3b   : > { %v2152_v41 = vor.u32 %v2345_v38, %v2151_v37  ;;  %v2044_v46 = vor.u32 %v2316_v42, %v2041_v43 }
  0x3c   : > { %986 = vmatmul.bf16.gmra.mxu0 %v1984_v44  ;;  %1066 = vmatmul.bf16.gmra.mxu2 %v2112_v45  ;;  %v2350_v44 = vld [vmem:[%s2692_s7 + $0x194] sm:$0xf]  ;;  %v2177_v45 = vld [vmem:[%s2692_s7 + $0x198] sm:$0xf0] }
  0x3d   : > { %v2180_v52 = vor.u32 %v2350_v44, %v2177_v45 }
  0x4a   : > { %2268 = vmatmul.msk.bf16.gmra.mxu1 %vm869_vm2, %v2004_v50  ;;  %2285 = vmatmul.msk.bf16.gmra.mxu3 %vm869_vm2, %v2140_v55  ;;  %v2159_v50 = vld [vmem:[%s2692_s7 + $0x170] sm:$0xf] }
  0x4b   : > { %v2160_v54 = vor.u32 %v2347_v51, %v2159_v50  ;;  %v2201_v50 = vld [vmem:[%s2692_s7 + $0x1c8] sm:$0xf0] }
  0x4c   : > { %991 = vmatmul.bf16.gmra.mxu0 %v1992_v56  ;;  %1071 = vmatmul.bf16.gmra.mxu2 %v2120_v57  ;;  %v2318_v57 = vld [vmem:[%s2692_s7 + $0x94] sm:$0xf] }
  0x4d   : > { %v2052_v61 = vor.u32 %v2318_v57, %v2049_v58 }
  0x5a   : > { %2269 = vmatmul.msk.bf16.gmra.mxu1 %vm869_vm2, %v2012_v62  ;;  %2286 = vmatmul.msk.bf16.gmra.mxu3 %vm869_vm2, %v2148_v3  ;;  %v2039_v62 = vld [vmem:[%s2692_s7 + $0x80] sm:$0xf]  ;;  %v2349_v3 = vld [vmem:[%s2692_s7 + $0x184] sm:$0xf0] }
  0x5b   : > { %v2168_v7 = vor.u32 %v2349_v3, %v2167_v2 }
  0x5c   : > { %996 = vmatmul.bf16.gmra.mxu0 %v2000_v4  ;;  %1076 = vmatmul.bf16.gmra.mxu2 %v2128_v5  ;;  %v2188_v4 = vor.u32 %v2352_v59, %v2185_v60  ;;  %v2040_v5 = vor.u32 %v2317_v63, %v2039_v62  ;;  %v2183_v60 = vld [vmem:[%s2692_s7 + $0x1a0] sm:$0xf] }
  0x6a   : > { %2270 = vmatmul.msk.bf16.gmra.mxu1 %vm869_vm2, %v2020_v10  ;;  %2287 = vmatmul.msk.bf16.gmra.mxu3 %vm869_vm2, %v2156_v15 }
  0x6c   : > { %1001 = vmatmul.bf16.gmra.mxu0 %v2008_v16  ;;  %1081 = vmatmul.bf16.gmra.mxu2 %v2136_v17  ;;  %v2320_v17 = vld [vmem:[%s2692_s7 + $0xa4] sm:$0xf] }
  0x6d   : > { %v2060_v23 = vor.u32 %v2320_v17, %v2057_v18 }
  0x7a   : > { %2271 = vmatmul.msk.bf16.gmra.mxu1 %vm869_vm2, %v2028_v22  ;;  %2288 = vmatmul.msk.bf16.gmra.mxu3 %vm869_vm2, %v2164_v27 }
  0x7c   : > { %1006 = vmatmul.bf16.gmra.mxu0 %v2016_v28  ;;  %1086 = vmatmul.bf16.gmra.mxu2 %v2144_v29  ;;  %v2175_v29 = vld [vmem:[%s2692_s7 + $0x190] sm:$0xf] }
  0x7d   : > { %v2176_v37 = vor.u32 %v2351_v30, %v2175_v29  ;;  %v2209_v29 = vld [vmem:[%s2692_s7 + $0x1d8] sm:$0xf0] }
  0x8a   : > { %2272 = vmatmul.msk.bf16.gmra.mxu1 %vm869_vm2, %v2036_v34  ;;  %2289 = vmatmul.msk.bf16.gmra.mxu3 %vm869_vm2, %v2172_v39 }
  0x8c   : > { %1011 = vmatmul.bf16.gmra.mxu0 %v2024_v40  ;;  %1091 = vmatmul.bf16.gmra.mxu2 %v2152_v41 }
  0x97   : > { %v1151_v49 = vpop.f32.mrf.mxu1 }
  0x9a   : > { %2273 = vmatmul.msk.bf16.gmra.mxu1 %vm869_vm2, %v2044_v46  ;;  %2290 = vmatmul.msk.bf16.gmra.mxu3 %vm869_vm2, %v2180_v52  ;;  %v2322_v46 = vld [vmem:[%s2692_s7 + $0xb4] sm:$0xf] }
  0x9c   : > { %1016 = vmatmul.bf16.gmra.mxu0 %v2032_v53  ;;  %1096 = vmatmul.bf16.gmra.mxu2 %v2160_v54  ;;  %v2068_v53 = vor.u32 %v2322_v46, %v2065_v47  ;;  %v2055_v54 = vld [vmem:[%s2692_s7 + $0xa0] sm:$0xf] }
  0x9d   : > { %v2795_v55 = vpop.f32.mrf.mxu3 }
  0x9f   : > { %v1153_v56 = vpop.f32.mrf.mxu1 }
  0xa5   : > { %v2803_v0 = vpop.f32.mrf.mxu3 }
  0xa7   : > { %v1156_v1 = vpop.f32.mrf.mxu1 }
  0xa9   : > { %v982_v6 = vpop.f32.mrf.mxu0 }
  0xaa   : > { %2274 = vmatmul.msk.bf16.gmra.mxu1 %vm869_vm2, %v2052_v61  ;;  %2291 = vmatmul.msk.bf16.gmra.mxu3 %vm869_vm2, %v2188_v4  ;;  %v1152_v8 = vadd.f32 %v1151_v49, %v982_v6  ;;  %v2356_v49 = vld [vmem:[%s2692_s7 + $0x1c4] sm:$0xf]  ;;  %v2353_v61 = vld [vmem:[%s2692_s7 + $0x1a4] sm:$0xf0] }
  0xab   : > { %v2204_v62 = vor.u32 %v2356_v49, %v2201_v50  ;;  %v2184_v6 = vor.u32 %v2353_v61, %v2183_v60 }
  0xac   : > { %1021 = vmatmul.bf16.gmra.mxu0 %v2040_v5  ;;  %1101 = vmatmul.bf16.gmra.mxu2 %v2168_v7  ;;  %v1510_v12 = vmul.f32 %v2812_v9, %v1152_v8 }
  0xad   : > { %v2814_v10 = vpop.f32.mrf.mxu3 }
  0xae   : > { %v1578_v21 = vadd.f32 %v2820_v13, %v1510_v12 }
  0xaf   : > { %v1158_v11 = vpop.f32.mrf.mxu1  ;;  %v2822_v14 = vpop.f32.mrf.mxu2 }
  0xb0   : > { %v1642_v32 = vmax.f32 %v1578_v21, 0.0 }
  0xb1   : > { %v984_v15 = vpop.f32.mrf.mxu0 }
  0xb2   : > { %v1154_v16 = vadd.f32 %v1153_v56, %v984_v15  ;;  %v2321_v56 = vld [vmem:[%s2692_s7 + $0xa4] sm:$0xf0] }
  0xb3   : > { %v2056_v3 = vor.u32 %v2321_v56, %v2055_v54 }
  0xb4   : > { %v1511_v22 = vmul.f32 %v2812_v9, %v1154_v16 }
  0xb5   : > { %v2832_v26 = vpop.f32.mrf.mxu3 }
  0xb6   : > { %v1579_v27 = vadd.f32 %v2820_v13, %v1511_v22 }
  0xb7   : > { %v1161_v28 = vpop.f32.mrf.mxu1  ;;  %v2838_v34 = vpop.f32.mrf.mxu2 }
  0xb8   : > { %v1643_v33 = vmax.f32 %v1579_v27, 0.0 }
  0xb9   : > { %v987_v36 = vpop.f32.mrf.mxu0 }
  0xba   : > { %2275 = vmatmul.msk.bf16.gmra.mxu1 %vm869_vm2, %v2060_v23  ;;  %v2376_v38 = vpack.c.bf16 %v1643_v33, %v1642_v32  ;;  %2292 = vmatmul.msk.bf16.gmra.mxu3 %vm869_vm2, %v2196_v31  ;;  %v1157_v39 = vadd.f32 %v1156_v1, %v987_v36  ;;  %v2076_v32 = vor.u32 %v2324_v24, %v2073_v25  ;;  %v2063_v33 = vld [vmem:[%s2692_s7 + $0xb0] sm:$0xf] }
  0xbc   : > { %2377 = vst [vmem:[%s2843_s29] sm:$0xff] %v2376_v38   ;;  %1026 = vmatmul.bf16.gmra.mxu0 %v2048_v35  ;;  %1106 = vmatmul.bf16.gmra.mxu2 %v2176_v37  ;;  %v1512_v42 = vmul.f32 %v2812_v9, %v1157_v39  ;;  %v2323_v35 = vld [vmem:[%s2692_s7 + $0xb4] sm:$0xf0]  ;;  %v2191_v39 = vld [vmem:[%s2692_s7 + $0x1b0] sm:$0xf] }
  0xbd   : > { %v2848_v40 = vpop.f32.mrf.mxu3  ;;  %v2064_v46 = vor.u32 %v2323_v35, %v2063_v33 }
  0xbe   : > { %v1580_v51 = vadd.f32 %v2820_v13, %v1512_v42 }
  0xbf   : > { %v1163_v41 = vpop.f32.mrf.mxu1  ;;  %v1067_v43 = vpop.f32.mrf.mxu2 }
  0xc0   : > { %v1237_v48 = vadd.f32 %v2795_v55, %v1067_v43  ;;  %v1644_v63 = vmax.f32 %v1580_v51, 0.0 }
  0xc1   : > { %v989_v44 = vpop.f32.mrf.mxu0 }
  0xc2   : > { %v1159_v45 = vadd.f32 %v1158_v11, %v989_v44  ;;  %v1544_v55 = vmul.f32 %v2812_v9, %v1237_v48 }
  0xc4   : > { %v1513_v52 = vmul.f32 %v2812_v9, %v1159_v45  ;;  %v1612_v8 = vadd.f32 %v2820_v13, %v1544_v55 }
  0xc5   : > { %v2860_v57 = vpop.f32.mrf.mxu3 }
  0xc6   : > { %v1581_v58 = vadd.f32 %v2820_v13, %v1513_v52  ;;  %v1676_v17 = vmax.f32 %v1612_v8, 0.0 }
  0xc7   : > { %v1166_v59 = vpop.f32.mrf.mxu1  ;;  %v1069_v2 = vpop.f32.mrf.mxu2 }
  0xc8   : > { %v1645_v1 = vmax.f32 %v1581_v58, 0.0  ;;  %v1239_v4 = vadd.f32 %v2803_v0, %v1069_v2  ;;  %v2081_v2 = vld [vmem:[%s2692_s7 + $0xd8] sm:$0xf0] }
  0xc9   : > { %v992_v5 = vpop.f32.mrf.mxu0 }
  0xca   : > { %2276 = vmatmul.msk.bf16.gmra.mxu1 %vm869_vm2, %v2068_v53  ;;  %v2381_v7 = vpack.c.bf16 %v1645_v1, %v1644_v63  ;;  %2293 = vmatmul.msk.bf16.gmra.mxu3 %vm869_vm2, %v2204_v62  ;;  %v1545_v11 = vmul.f32 %v2812_v9, %v1239_v4  ;;  %v1162_v12 = vadd.f32 %v1161_v28, %v992_v5  ;;  %v2358_v28 = vld [vmem:[%s2692_s7 + $0x1d4] sm:$0xf]  ;;  %v2360_v4 = vld [vmem:[%s2692_s7 + $0x1e4] sm:$0xf]  ;;  %v2217_v5 = vld [vmem:[%s2692_s7 + $0x1e8] sm:$0xf0] }
  0xcb   : > { %v2212_v42 = vor.u32 %v2358_v28, %v2209_v29  ;;  %v2326_v1 = vld [vmem:[%s2692_s7 + $0xd4] sm:$0xf] }
  0xcc   : > { %2533 = vst [vmem:[%s2843_s29 + $0x8] sm:$0xff] %v2381_v7   ;;  %1031 = vmatmul.bf16.gmra.mxu0 %v2056_v3  ;;  %v1613_v0 = vadd.f32 %v2820_v13, %v1545_v11  ;;  %1111 = vmatmul.bf16.gmra.mxu2 %v2184_v6  ;;  %v1514_v19 = vmul.f32 %v2812_v9, %v1162_v12  ;;  %v2071_v11 = vld [vmem:[%s2692_s7 + $0xc0] sm:$0xf]  ;;  %v2325_v12 = vld [vmem:[%s2692_s7 + $0xc4] sm:$0xf0] }
  0xcd   : > { %v2873_v15 = vpop.f32.mrf.mxu3  ;;  %v2084_v8 = vor.u32 %v2326_v1, %v2081_v2  ;;  %v2072_v24 = vor.u32 %v2325_v12, %v2071_v11 }
  0xce   : > { %v1677_v18 = vmax.f32 %v1613_v0, 0.0  ;;  %v1582_v30 = vadd.f32 %v2820_v13, %v1514_v19  ;;  %v2357_v19 = vld [vmem:[%s2692_s7 + $0x1c4] sm:$0xf0] }
  0xcf   : > { %v1168_v16 = vpop.f32.mrf.mxu1  ;;  %v1072_v20 = vpop.f32.mrf.mxu2 }
  0xd0   : > { %v2461_v21 = vpack.c.bf16 %v1677_v18, %v1676_v17  ;;  %v1242_v27 = vadd.f32 %v2814_v10, %v1072_v20  ;;  %v1646_v43 = vmax.f32 %v1582_v30, 0.0  ;;  %v2199_v18 = vld [vmem:[%s2692_s7 + $0x1c0] sm:$0xf]  ;;  %v2220_v20 = vor.u32 %v2360_v4, %v2217_v5 }
  0xd1   : > { %v994_v22 = vpop.f32.mrf.mxu0  ;;  %v2200_v28 = vor.u32 %v2357_v19, %v2199_v18 }
  0xd2   : > { %v1164_v23 = vadd.f32 %v1163_v41, %v994_v22  ;;  %2549 = vst [vmem:[%s2843_s29 + $0x88] sm:$0xff] %v2461_v21   ;;  %v2355_v41 = vld [vmem:[%s2692_s7 + $0x1b4] sm:$0xf0]  ;;  %v1546_v10 = vmul.f32 %v2812_v9, %v1242_v27 }
  0xd3   : > { %v2192_v49 = vor.u32 %v2355_v41, %v2191_v39 }
  0xd4   : > { %v1515_v31 = vmul.f32 %v2812_v9, %v1164_v23  ;;  %v1614_v51 = vadd.f32 %v2820_v13, %v1546_v10 }
  0xd5   : > { %v2886_v36 = vpop.f32.mrf.mxu3 }
  0xd6   : > { %v1583_v37 = vadd.f32 %v2820_v13, %v1515_v31  ;;  %v1678_v58 = vmax.f32 %v1614_v51, 0.0 }
  0xd7   : > { %v1171_v38 = vpop.f32.mrf.mxu1  ;;  %v1074_v45 = vpop.f32.mrf.mxu2 }
  0xd8   : > { %v1647_v44 = vmax.f32 %v1583_v37, 0.0  ;;  %v1244_v47 = vadd.f32 %v2832_v26, %v1074_v45  ;;  %v2089_v45 = vld [vmem:[%s2692_s7 + $0xe8] sm:$0xf0] }
  0xd9   : > { %v997_v48 = vpop.f32.mrf.mxu0 }
  0xda   : > { %2277 = vmatmul.msk.bf16.gmra.mxu1 %vm869_vm2, %v2076_v32  ;;  %v2386_v50 = vpack.c.bf16 %v1647_v44, %v1646_v43  ;;  %2294 = vmatmul.msk.bf16.gmra.mxu3 %vm869_vm2, %v2212_v42  ;;  %v1547_v52 = vmul.f32 %v2812_v9, %v1244_v47  ;;  %v1167_v53 = vadd.f32 %v1166_v59, %v997_v48  ;;  %v2328_v44 = vld [vmem:[%s2692_s7 + $0xe4] sm:$0xf]  ;;  %v2362_v47 = vld [vmem:[%s2692_s7 + $0x1f4] sm:$0xf]  ;;  %v2225_v48 = vld [vmem:[%s2692_s7 + $0x1f8] sm:$0xf0] }
  0xdb   : > { %v2092_v51 = vor.u32 %v2328_v44, %v2089_v45 }
  0xdc   : > { %2534 = vst [vmem:[%s2843_s29 + $0x10] sm:$0xff] %v2386_v50   ;;  %1036 = vmatmul.bf16.gmra.mxu0 %v2064_v46  ;;  %v1615_v26 = vadd.f32 %v2820_v13, %v1547_v52  ;;  %1116 = vmatmul.bf16.gmra.mxu2 %v2192_v49  ;;  %v1516_v61 = vmul.f32 %v2812_v9, %v1167_v53  ;;  %v2079_v52 = vld [vmem:[%s2692_s7 + $0xd0] sm:$0xf]  ;;  %v2327_v53 = vld [vmem:[%s2692_s7 + $0xd4] sm:$0xf0] }
  0xdd   : > { %v2899_v54 = vpop.f32.mrf.mxu3  ;;  %v2080_v1 = vor.u32 %v2327_v53, %v2079_v52 }
  0xde   : > { %v1679_v60 = vmax.f32 %v1615_v26, 0.0  ;;  %v1584_v6 = vadd.f32 %v2820_v13, %v1516_v61  ;;  %v2359_v61 = vld [vmem:[%s2692_s7 + $0x1d4] sm:$0xf0] }
  0xdf   : > { %v1173_v56 = vpop.f32.mrf.mxu1  ;;  %v1077_v62 = vpop.f32.mrf.mxu2 }
  0xe0   : > { %v2466_v55 = vpack.c.bf16 %v1679_v60, %v1678_v58  ;;  %v1247_v3 = vadd.f32 %v2848_v40, %v1077_v62  ;;  %v1648_v21 = vmax.f32 %v1584_v6, 0.0  ;;  %v2207_v60 = vld [vmem:[%s2692_s7 + $0x1d0] sm:$0xf]  ;;  %v2228_v62 = vor.u32 %v2362_v47, %v2225_v48 }
  0xe1   : > { %v999_v63 = vpop.f32.mrf.mxu0  ;;  %v2208_v4 = vor.u32 %v2359_v61, %v2207_v60 }
  0xe2   : > { %v1169_v59 = vadd.f32 %v1168_v16, %v999_v63  ;;  %2550 = vst [vmem:[%s2843_s29 + $0x90] sm:$0xff] %v2466_v55   ;;  %v1548_v40 = vmul.f32 %v2812_v9, %v1247_v3 }
  0xe4   : > { %v1517_v7 = vmul.f32 %v2812_v9, %v1169_v59  ;;  %v1616_v30 = vadd.f32 %v2820_v13, %v1548_v40 }
  0xe5   : > { %v2912_v0 = vpop.f32.mrf.mxu3 }
  0xe6   : > { %v1585_v17 = vadd.f32 %v2820_v13, %v1517_v7  ;;  %v1680_v37 = vmax.f32 %v1616_v30, 0.0  ;;  %v2329_v30 = vld [vmem:[%s2692_s7 + $0xe4] sm:$0xf0] }
  0xe7   : > { %v1176_v16 = vpop.f32.mrf.mxu1  ;;  %v1079_v23 = vpop.f32.mrf.mxu2 }
  0xe8   : > { %v1649_v22 = vmax.f32 %v1585_v17, 0.0  ;;  %v1249_v25 = vadd.f32 %v2860_v57, %v1079_v23  ;;  %v2097_v23 = vld [vmem:[%s2692_s7 + $0xf8] sm:$0xf0] }
  0xe9   : > { %v1002_v27 = vpop.f32.mrf.mxu0 }
  0xea   : > { %2278 = vmatmul.msk.bf16.gmra.mxu1 %vm869_vm2, %v2084_v8  ;;  %v2391_v29 = vpack.c.bf16 %v1649_v22, %v1648_v21  ;;  %2295 = vmatmul.msk.bf16.gmra.mxu3 %vm869_vm2, %v2220_v20  ;;  %v1549_v31 = vmul.f32 %v2812_v9, %v1249_v25  ;;  %v1172_v32 = vadd.f32 %v1171_v38, %v1002_v27 }
  0xec   : > { %2535 = vst [vmem:[%s2843_s29 + $0x18] sm:$0xff] %v2391_v29   ;;  %1041 = vmatmul.bf16.gmra.mxu0 %v2072_v24  ;;  %v1617_v57 = vadd.f32 %v2820_v13, %v1549_v31  ;;  %1121 = vmatmul.bf16.gmra.mxu2 %v2200_v28  ;;  %v1518_v41 = vmul.f32 %v2812_v9, %v1172_v32  ;;  %v2087_v29 = vld [vmem:[%s2692_s7 + $0xe0] sm:$0xf] }
  0xed   : > { %v2925_v33 = vpop.f32.mrf.mxu3 }
  0xee   : > { %v1681_v39 = vmax.f32 %v1617_v57, 0.0  ;;  %v1586_v49 = vadd.f32 %v2820_v13, %v1518_v41  ;;  %v2215_v57 = vld [vmem:[%s2692_s7 + $0x1e0] sm:$0xf] }
  0xef   : > { %v1178_v35 = vpop.f32.mrf.mxu1  ;;  %v1082_v42 = vpop.f32.mrf.mxu2 }
  0xf0   : > { %v2471_v10 = vpack.c.bf16 %v1681_v39, %v1680_v37  ;;  %v1252_v46 = vadd.f32 %v2873_v15, %v1082_v42  ;;  %v1650_v55 = vmax.f32 %v1586_v49, 0.0  ;;  %v2361_v37 = vld [vmem:[%s2692_s7 + $0x1e4] sm:$0xf0] }
  0xf1   : > { %v1004_v43 = vpop.f32.mrf.mxu0  ;;  %v2216_v44 = vor.u32 %v2361_v37, %v2215_v57 }
  0xf2   : > { %v1174_v38 = vadd.f32 %v1173_v56, %v1004_v43  ;;  %2551 = vst [vmem:[%s2843_s29 + $0x98] sm:$0xff] %v2471_v10   ;;  %v1550_v15 = vmul.f32 %v2812_v9, %v1252_v46  ;;  %v2088_v10 = vor.u32 %v2329_v30, %v2087_v29 }
  0xf4   : > { %v1519_v50 = vmul.f32 %v2812_v9, %v1174_v38  ;;  %v1618_v6 = vadd.f32 %v2820_v13, %v1550_v15  ;;  %v2105_v15 = vld [vmem:[%s2692_s7 + $0x108] sm:$0xf0] }
  0xf5   : > { %v2938_v26 = vpop.f32.mrf.mxu3 }
  0xf6   : > { %v1587_v58 = vadd.f32 %v2820_v13, %v1519_v50  ;;  %v1682_v17 = vmax.f32 %v1618_v6, 0.0  ;;  %v2223_v6 = vld [vmem:[%s2692_s7 + $0x1f0] sm:$0xf] }
  0xf7   : > { %v1181_v56 = vpop.f32.mrf.mxu1  ;;  %v1084_v59 = vpop.f32.mrf.mxu2 }
  0xf8   : > { %v1651_v63 = vmax.f32 %v1587_v58, 0.0  ;;  %v1254_v2 = vadd.f32 %v2886_v36, %v1084_v59 }
  0xf9   : > { %v1007_v3 = vpop.f32.mrf.mxu0 }
  0xfa   : > { %2279 = vmatmul.msk.bf16.gmra.mxu1 %vm869_vm2, %v2092_v51  ;;  %v2396_v5 = vpack.c.bf16 %v1651_v63, %v1650_v55  ;;  %2296 = vmatmul.msk.bf16.gmra.mxu3 %vm869_vm2, %v2228_v62  ;;  %v1551_v7 = vmul.f32 %v2812_v9, %v1254_v2  ;;  %v1177_v8 = vadd.f32 %v1176_v16, %v1007_v3  ;;  %v2330_v16 = vld [vmem:[%s2692_s7 + $0xf4] sm:$0xf]  ;;  %v2332_v62 = vld [vmem:[%s2692_s7 + $0x104] sm:$0xf]  ;;  %v2095_v2 = vld [vmem:[%s2692_s7 + $0xf0] sm:$0xf] }
  0xfb   : > { %v2100_v28 = vor.u32 %v2330_v16, %v2097_v23  ;;  %v2331_v3 = vld [vmem:[%s2692_s7 + $0xf4] sm:$0xf0] }
  0xfc   : > { %2536 = vst [vmem:[%s2843_s29 + $0x20] sm:$0xff] %v2396_v5   ;;  %1046 = vmatmul.bf16.gmra.mxu0 %v2080_v1  ;;  %v1619_v11 = vadd.f32 %v2820_v13, %v1551_v7  ;;  %1126 = vmatmul.bf16.gmra.mxu2 %v2208_v4  ;;  %v1520_v19 = vmul.f32 %v2812_v9, %v1177_v8  ;;  %v2363_v7 = vld [vmem:[%s2692_s7 + $0x1f4] sm:$0xf0] }
  0xfd   : > { %v2951_v12 = vpop.f32.mrf.mxu3  ;;  %v2108_v1 = vor.u32 %v2332_v62, %v2105_v15 }
  0xfe   : > { %v1683_v18 = vmax.f32 %v1619_v11, 0.0  ;;  %v1588_v25 = vadd.f32 %v2820_v13, %v1520_v19 }
  0xff   : > { %v1183_v36 = vpop.f32.mrf.mxu1  ;;  %v1087_v20 = vpop.f32.mrf.mxu2 }
 0x100   : > { %v2476_v40 = vpack.c.bf16 %v1683_v18, %v1682_v17  ;;  %v1257_v24 = vadd.f32 %v2899_v54, %v1087_v20  ;;  %v1652_v39 = vmax.f32 %v1588_v25, 0.0  ;;  %v2096_v18 = vor.u32 %v2331_v3, %v2095_v2 }
 0x101   : > { %v1009_v21 = vpop.f32.mrf.mxu0  ;;  %v2224_v20 = vor.u32 %v2363_v7, %v2223_v6 }
 0x102   : > { %v1179_v22 = vadd.f32 %v1178_v35, %v1009_v21  ;;  %2552 = vst [vmem:[%s2843_s29 + $0xa0] sm:$0xff] %v2476_v40   ;;  %v1552_v35 = vmul.f32 %v2812_v9, %v1257_v24 }
 0x104   : > { %v1521_v27 = vmul.f32 %v2812_v9, %v1179_v22  ;;  %v1620_v46 = vadd.f32 %v2820_v13, %v1552_v35 }
 0x105   : > { %v2966_v54 = vpop.f32.mrf.mxu3 }
 0x106   : > { %v1589_v31 = vadd.f32 %v2820_v13, %v1521_v27 }
 0x107   : > { %v1186_v32 = vpop.f32.mrf.mxu1  ;;  %v1089_v42 = vpop.f32.mrf.mxu2 }
 0x108   : > { %v1653_v41 = vmax.f32 %v1589_v31, 0.0  ;;  %v1259_v43 = vadd.f32 %v2912_v0, %v1089_v42  ;;  %v1684_v0 = vmax.f32 %v1620_v46, 0.0 }
 0x109   : > { %v1012_v38 = vpop.f32.mrf.mxu0 }
 0x10a   : > { %2280 = vmatmul.msk.bf16.gmra.mxu1 %vm869_vm2, %v2100_v28  ;;  %v2401_v45 = vpack.c.bf16 %v1653_v41, %v1652_v39  ;;  %v1553_v47 = vmul.f32 %v2812_v9, %v1259_v43  ;;  %v1182_v48 = vadd.f32 %v1181_v56, %v1012_v38 }
 0x10c   : > { %2537 = vst [vmem:[%s2843_s29 + $0x28] sm:$0xff] %v2401_v45   ;;  %1051 = vmatmul.bf16.gmra.mxu0 %v2088_v10  ;;  %v1621_v49 = vadd.f32 %v2820_v13, %v1553_v47  ;;  %1131 = vmatmul.bf16.gmra.mxu2 %v2216_v44  ;;  %v1522_v52 = vmul.f32 %v2812_v9, %v1182_v48 }
 0x10d   : > { %v2977_v56 = vpop.f32.mrf.mxu3 }
 0x10e   : > { %v1685_v51 = vmax.f32 %v1621_v49, 0.0  ;;  %v1590_v63 = vadd.f32 %v2820_v13, %v1522_v52 }
 0x10f   : > { %v1188_v50 = vpop.f32.mrf.mxu1  ;;  %v1092_v53 = vpop.f32.mrf.mxu2 }
 0x110   : > { %v2481_v58 = vpack.c.bf16 %v1685_v51, %v1684_v0  ;;  %v1262_v55 = vadd.f32 %v2925_v33, %v1092_v53  ;;  %v1654_v11 = vmax.f32 %v1590_v63, 0.0 }
 0x111   : > { %v1014_v60 = vpop.f32.mrf.mxu0 }
 0x112   : > { %v1184_v61 = vadd.f32 %v1183_v36, %v1014_v60  ;;  %2553 = vst [vmem:[%s2843_s29 + $0xa8] sm:$0xff] %v2481_v58   ;;  %v1554_v8 = vmul.f32 %v2812_v9, %v1262_v55 }
 0x114   : > { %v1523_v59 = vmul.f32 %v2812_v9, %v1184_v61  ;;  %v1622_v21 = vadd.f32 %v2820_v13, %v1554_v8 }
 0x115   : > { %v1273_v23 = vpop.f32.mrf.mxu3 }
 0x116   : > { %v1591_v4 = vadd.f32 %v2820_v13, %v1523_v59  ;;  %v1686_v27 = vmax.f32 %v1622_v21, 0.0 }
 0x117   : > { %v1191_v5 = vpop.f32.mrf.mxu1  ;;  %v1094_v17 = vpop.f32.mrf.mxu2 }
 0x118   : > { %v1655_v36 = vmax.f32 %v1591_v4, 0.0  ;;  %v1264_v33 = vadd.f32 %v2938_v26, %v1094_v17 }
 0x119   : > { %v1017_v19 = vpop.f32.mrf.mxu0 }
 0x11a   : > { %2281 = vmatmul.msk.bf16.gmra.mxu1 %vm869_vm2, %v2108_v1  ;;  %v2406_v40 = vpack.c.bf16 %v1655_v36, %v1654_v11  ;;  %v1555_v22 = vmul.f32 %v2812_v9, %v1264_v33  ;;  %v1187_v16 = vadd.f32 %v1186_v32, %v1017_v19 }
 0x11c   : > { %2538 = vst [vmem:[%s2843_s29 + $0x30] sm:$0xff] %v2406_v40   ;;  %1056 = vmatmul.bf16.gmra.mxu0 %v2096_v18  ;;  %v1623_v24 = vadd.f32 %v2820_v13, %v1555_v22  ;;  %1136 = vmatmul.bf16.gmra.mxu2 %v2224_v20  ;;  %v1524_v28 = vmul.f32 %v2812_v9, %v1187_v16 }
 0x11d   : > { %v1276_v42 = vpop.f32.mrf.mxu3 }
 0x11e   : > { %v1687_v26 = vmax.f32 %v1623_v24, 0.0  ;;  %v1592_v32 = vadd.f32 %v2820_v13, %v1524_v28 }
 0x11f   : > { %v1193_v25 = vpop.f32.mrf.mxu1  ;;  %v1097_v29 = vpop.f32.mrf.mxu2 }
 0x120   : > { %v2486_v30 = vpack.c.bf16 %v1687_v26, %v1686_v27  ;;  %v1267_v37 = vadd.f32 %v2951_v12, %v1097_v29  ;;  %v1656_v43 = vmax.f32 %v1592_v32, 0.0 }
 0x121   : > { %v1019_v31 = vpop.f32.mrf.mxu0 }
 0x122   : > { %v1189_v57 = vadd.f32 %v1188_v50, %v1019_v31  ;;  %2554 = vst [vmem:[%s2843_s29 + $0xb0] sm:$0xff] %v2486_v30   ;;  %v1556_v10 = vmul.f32 %v2812_v9, %v1267_v37 }
 0x124   : > { %v1525_v35 = vmul.f32 %v2812_v9, %v1189_v57  ;;  %v1624_v12 = vadd.f32 %v2820_v13, %v1556_v10 }
 0x125   : > { %v1278_v60 = vpop.f32.mrf.mxu3 }
 0x126   : > { %v1593_v39 = vadd.f32 %v2820_v13, %v1525_v35  ;;  %v1688_v51 = vmax.f32 %v1624_v12, 0.0 }
 0x127   : > { %v1196_v41 = vpop.f32.mrf.mxu1  ;;  %v1099_v44 = vpop.f32.mrf.mxu2 }
 0x128   : > { %v1657_v38 = vmax.f32 %v1593_v39, 0.0  ;;  %v1269_v45 = vadd.f32 %v2966_v54, %v1099_v44 }
 0x129   : > { %v1022_v46 = vpop.f32.mrf.mxu0 }
 0x12a   : > { %v2411_v47 = vpack.c.bf16 %v1657_v38, %v1656_v43  ;;  %v1557_v48 = vmul.f32 %v2812_v9, %v1269_v45  ;;  %v1192_v49 = vadd.f32 %v1191_v5, %v1022_v46 }
 0x12c   : > { %2539 = vst [vmem:[%s2843_s29 + $0x38] sm:$0xff] %v2411_v47   ;;  %v1625_v50 = vadd.f32 %v2820_v13, %v1557_v48  ;;  %v1526_v53 = vmul.f32 %v2812_v9, %v1192_v49 }
 0x12d   : > { %v1281_v11 = vpop.f32.mrf.mxu3 }
 0x12e   : > { %v1689_v52 = vmax.f32 %v1625_v50, 0.0  ;;  %v1594_v55 = vadd.f32 %v2820_v13, %v1526_v53 }
 0x12f   : > { %v1198_v0 = vpop.f32.mrf.mxu1  ;;  %v1102_v58 = vpop.f32.mrf.mxu2 }
 0x130   : > { %v2491_v61 = vpack.c.bf16 %v1689_v52, %v1688_v51  ;;  %v1272_v15 = vadd.f32 %v2977_v56, %v1102_v58  ;;  %v1658_v3 = vmax.f32 %v1594_v55, 0.0 }
 0x131   : > { %v1024_v54 = vpop.f32.mrf.mxu0 }
 0x132   : > { %v1194_v62 = vadd.f32 %v1193_v25, %v1024_v54  ;;  %2555 = vst [vmem:[%s2843_s29 + $0xb8] sm:$0xff] %v2491_v61   ;;  %v1558_v2 = vmul.f32 %v2812_v9, %v1272_v15 }
 0x134   : > { %v1527_v63 = vmul.f32 %v2812_v9, %v1194_v62  ;;  %v1626_v36 = vadd.f32 %v2820_v13, %v1558_v2 }
 0x135   : > { %v1283_v26 = vpop.f32.mrf.mxu3 }
 0x136   : > { %v1595_v59 = vadd.f32 %v2820_v13, %v1527_v63  ;;  %v1690_v19 = vmax.f32 %v1626_v36, 0.0 }
 0x137   : > { %v1201_v1 = vpop.f32.mrf.mxu1  ;;  %v1104_v5 = vpop.f32.mrf.mxu2 }
 0x138   : > { %v1659_v4 = vmax.f32 %v1595_v59, 0.0  ;;  %v1274_v6 = vadd.f32 %v1273_v23, %v1104_v5 }
 0x139   : > { %v1027_v7 = vpop.f32.mrf.mxu0 }
 0x13a   : > { %v2416_v8 = vpack.c.bf16 %v1659_v4, %v1658_v3  ;;  %v1559_v56 = vmul.f32 %v2812_v9, %v1274_v6  ;;  %v1197_v17 = vadd.f32 %v1196_v41, %v1027_v7 }
 0x13c   : > { %2540 = vst [vmem:[%s2843_s29 + $0x40] sm:$0xff] %v2416_v8   ;;  %v1627_v18 = vadd.f32 %v2820_v13, %v1559_v56  ;;  %v1528_v40 = vmul.f32 %v2812_v9, %v1197_v17 }
 0x13d   : > { %v1286_v44 = vpop.f32.mrf.mxu3 }
 0x13e   : > { %v1691_v20 = vmax.f32 %v1627_v18, 0.0  ;;  %v1596_v25 = vadd.f32 %v2820_v13, %v1528_v40 }
 0x13f   : > { %v1203_v33 = vpop.f32.mrf.mxu1  ;;  %v1107_v21 = vpop.f32.mrf.mxu2 }
 0x140   : > { %v2496_v22 = vpack.c.bf16 %v1691_v20, %v1690_v19  ;;  %v1277_v24 = vadd.f32 %v1276_v42, %v1107_v21  ;;  %v1660_v31 = vmax.f32 %v1596_v25, 0.0 }
 0x141   : > { %v1029_v16 = vpop.f32.mrf.mxu0 }
 0x142   : > { %v1199_v23 = vadd.f32 %v1198_v0, %v1029_v16  ;;  %2556 = vst [vmem:[%s2843_s29 + $0xc0] sm:$0xff] %v2496_v22   ;;  %v1560_v30 = vmul.f32 %v2812_v9, %v1277_v24 }
 0x144   : > { %v1529_v27 = vmul.f32 %v2812_v9, %v1199_v23  ;;  %v1628_v41 = vadd.f32 %v2820_v13, %v1560_v30 }
 0x145   : > { %v1288_v15 = vpop.f32.mrf.mxu3 }
 0x146   : > { %v1597_v28 = vadd.f32 %v2820_v13, %v1529_v27  ;;  %v1692_v45 = vmax.f32 %v1628_v41, 0.0 }
 0x147   : > { %v1206_v29 = vpop.f32.mrf.mxu1  ;;  %v1109_v37 = vpop.f32.mrf.mxu2 }
 0x148   : > { %v1661_v57 = vmax.f32 %v1597_v28, 0.0  ;;  %v1279_v32 = vadd.f32 %v1278_v60, %v1109_v37 }
 0x149   : > { %v1032_v35 = vpop.f32.mrf.mxu0 }
 0x14a   : > { %v2421_v39 = vpack.c.bf16 %v1661_v57, %v1660_v31  ;;  %v1561_v42 = vmul.f32 %v2812_v9, %v1279_v32  ;;  %v1202_v10 = vadd.f32 %v1201_v1, %v1032_v35 }
 0x14c   : > { %2541 = vst [vmem:[%s2843_s29 + $0x48] sm:$0xff] %v2421_v39   ;;  %v1629_v43 = vadd.f32 %v2820_v13, %v1561_v42  ;;  %v1530_v47 = vmul.f32 %v2812_v9, %v1202_v10 }
 0x14d   : > { %v1291_v18 = vpop.f32.mrf.mxu3 }
 0x14e   : > { %v1693_v46 = vmax.f32 %v1629_v43, 0.0  ;;  %v1598_v51 = vadd.f32 %v2820_v13, %v1530_v47 }
 0x14f   : > { %v1208_v38 = vpop.f32.mrf.mxu1  ;;  %v1112_v12 = vpop.f32.mrf.mxu2 }
 0x150   : > { %v2501_v48 = vpack.c.bf16 %v1693_v46, %v1692_v45  ;;  %v1282_v0 = vadd.f32 %v1281_v11, %v1112_v12  ;;  %v1662_v61 = vmax.f32 %v1598_v51, 0.0 }
 0x151   : > { %v1034_v49 = vpop.f32.mrf.mxu0 }
 0x152   : > { %v1204_v50 = vadd.f32 %v1203_v33, %v1034_v49  ;;  %2557 = vst [vmem:[%s2843_s29 + $0xc8] sm:$0xff] %v2501_v48   ;;  %v1562_v60 = vmul.f32 %v2812_v9, %v1282_v0 }
 0x154   : > { %v1531_v52 = vmul.f32 %v2812_v9, %v1204_v50  ;;  %v1630_v1 = vadd.f32 %v2820_v13, %v1562_v60 }
 0x155   : > { %v1293_v31 = vpop.f32.mrf.mxu3 }
 0x156   : > { %v1599_v53 = vadd.f32 %v2820_v13, %v1531_v52  ;;  %v1694_v6 = vmax.f32 %v1630_v1, 0.0 }
 0x157   : > { %v1211_v58 = vpop.f32.mrf.mxu1  ;;  %v1114_v62 = vpop.f32.mrf.mxu2 }
 0x158   : > { %v1663_v54 = vmax.f32 %v1599_v53, 0.0  ;;  %v1284_v55 = vadd.f32 %v1283_v26, %v1114_v62 }
 0x159   : > { %v1037_v63 = vpop.f32.mrf.mxu0 }
 0x15a   : > { %v2426_v59 = vpack.c.bf16 %v1663_v54, %v1662_v61  ;;  %v1563_v2 = vmul.f32 %v2812_v9, %v1284_v55  ;;  %v1207_v3 = vadd.f32 %v1206_v29, %v1037_v63 }
 0x15c   : > { %2542 = vst [vmem:[%s2843_s29 + $0x50] sm:$0xff] %v2426_v59   ;;  %v1631_v4 = vadd.f32 %v2820_v13, %v1563_v2  ;;  %v1532_v8 = vmul.f32 %v2812_v9, %v1207_v3 }
 0x15d   : > { %v1296_v12 = vpop.f32.mrf.mxu3 }
 0x15e   : > { %v1695_v7 = vmax.f32 %v1631_v4, 0.0  ;;  %v1600_v19 = vadd.f32 %v2820_v13, %v1532_v8 }
 0x15f   : > { %v1213_v5 = vpop.f32.mrf.mxu1  ;;  %v1117_v11 = vpop.f32.mrf.mxu2 }
 0x160   : > { %v2506_v36 = vpack.c.bf16 %v1695_v7, %v1694_v6  ;;  %v1287_v33 = vadd.f32 %v1286_v44, %v1117_v11  ;;  %v1664_v16 = vmax.f32 %v1600_v19, 0.0 }
 0x161   : > { %v1039_v56 = vpop.f32.mrf.mxu0 }
 0x162   : > { %v1209_v17 = vadd.f32 %v1208_v38, %v1039_v56  ;;  %2558 = vst [vmem:[%s2843_s29 + $0xd0] sm:$0xff] %v2506_v36   ;;  %v1564_v22 = vmul.f32 %v2812_v9, %v1287_v33 }
 0x164   : > { %v1533_v20 = vmul.f32 %v2812_v9, %v1209_v17  ;;  %v1632_v28 = vadd.f32 %v2820_v13, %v1564_v22 }
 0x165   : > { %v1298_v1 = vpop.f32.mrf.mxu3 }
 0x166   : > { %v1601_v40 = vadd.f32 %v2820_v13, %v1533_v20  ;;  %v1696_v32 = vmax.f32 %v1632_v28, 0.0 }
 0x167   : > { %v1216_v21 = vpop.f32.mrf.mxu1  ;;  %v1119_v24 = vpop.f32.mrf.mxu2 }
 0x168   : > { %v1665_v23 = vmax.f32 %v1601_v40, 0.0  ;;  %v1289_v25 = vadd.f32 %v1288_v15, %v1119_v24 }
 0x169   : > { %v1042_v27 = vpop.f32.mrf.mxu0 }
 0x16a   : > { %v2431_v26 = vpack.c.bf16 %v1665_v23, %v1664_v16  ;;  %v1565_v29 = vmul.f32 %v2812_v9, %v1289_v25  ;;  %v1212_v30 = vadd.f32 %v1211_v58, %v1042_v27 }
 0x16c   : > { %2543 = vst [vmem:[%s2843_s29 + $0x58] sm:$0xff] %v2431_v26   ;;  %v1633_v57 = vadd.f32 %v2820_v13, %v1565_v29  ;;  %v1534_v39 = vmul.f32 %v2812_v9, %v1212_v30 }
 0x16d   : > { %v1301_v40 = vpop.f32.mrf.mxu3 }
 0x16e   : > { %v1697_v35 = vmax.f32 %v1633_v57, 0.0  ;;  %v1602_v44 = vadd.f32 %v2820_v13, %v1534_v39 }
 0x16f   : > { %v1218_v37 = vpop.f32.mrf.mxu1  ;;  %v1122_v41 = vpop.f32.mrf.mxu2 }
 0x170   : > { %v2511_v42 = vpack.c.bf16 %v1697_v35, %v1696_v32  ;;  %v1292_v38 = vadd.f32 %v1291_v18, %v1122_v41  ;;  %v1666_v49 = vmax.f32 %v1602_v44, 0.0 }
 0x171   : > { %v1044_v10 = vpop.f32.mrf.mxu0 }
 0x172   : > { %v1214_v43 = vadd.f32 %v1213_v5, %v1044_v10  ;;  %2559 = vst [vmem:[%s2843_s29 + $0xd8] sm:$0xff] %v2511_v42   ;;  %v1566_v48 = vmul.f32 %v2812_v9, %v1292_v38 }
 0x174   : > { %v1535_v45 = vmul.f32 %v2812_v9, %v1214_v43  ;;  %v1634_v58 = vadd.f32 %v2820_v13, %v1566_v48 }
 0x175   : > { %v1303_v32 = vpop.f32.mrf.mxu3 }
 0x176   : > { %v1603_v46 = vadd.f32 %v2820_v13, %v1535_v45  ;;  %v1698_v15 = vmax.f32 %v1634_v58, 0.0 }
 0x177   : > { %v1221_v47 = vpop.f32.mrf.mxu1  ;;  %v1124_v0 = vpop.f32.mrf.mxu2 }
 0x178   : > { %v1667_v50 = vmax.f32 %v1603_v46, 0.0  ;;  %v1294_v51 = vadd.f32 %v1293_v31, %v1124_v0 }
 0x179   : > { %v1047_v52 = vpop.f32.mrf.mxu0 }
 0x17a   : > { %v2436_v53 = vpack.c.bf16 %v1667_v50, %v1666_v49  ;;  %v1567_v60 = vmul.f32 %v2812_v9, %v1294_v51  ;;  %v1217_v61 = vadd.f32 %v1216_v21, %v1047_v52  ;;  %v2601_v50 = vld [vmem:[%s3101_s2] ss:$0 sm:$0xff] }
 0x17c   : > { %2544 = vst [vmem:[%s2843_s29 + $0x60] sm:$0xff] %v2436_v53   ;;  %v1635_v54 = vadd.f32 %v2820_v13, %v1567_v60  ;;  %v1536_v63 = vmul.f32 %v2812_v9, %v1217_v61 }
 0x17d   : > { %v1306_v52 = vpop.f32.mrf.mxu3 }
 0x17e   : > { %v1699_v55 = vmax.f32 %v1635_v54, 0.0  ;;  %v1604_v6 = vadd.f32 %v2820_v13, %v1536_v63 }
 0x17f   : > { %v1223_v62 = vpop.f32.mrf.mxu1  ;;  %v1127_v59 = vpop.f32.mrf.mxu2 }
 0x180   : > { %v2516_v2 = vpack.c.bf16 %v1699_v55, %v1698_v15  ;;  %v1297_v5 = vadd.f32 %v1296_v12, %v1127_v59  ;;  %v1668_v56 = vmax.f32 %v1604_v6, 0.0 }
 0x181   : > { %v1049_v3 = vpop.f32.mrf.mxu0 }
 0x182   : > { %v1219_v4 = vadd.f32 %v1218_v37, %v1049_v3  ;;  %2560 = vst [vmem:[%s2843_s29 + $0xe0] sm:$0xff] %v2516_v2   ;;  %v1568_v36 = vmul.f32 %v2812_v9, %v1297_v5 }
 0x184   : > { %v1537_v7 = vmul.f32 %v2812_v9, %v1219_v4  ;;  %v1636_v21 = vadd.f32 %v2820_v13, %v1568_v36 }
 0x186   : > { %v1605_v8 = vadd.f32 %v2820_v13, %v1537_v7  ;;  %v1700_v25 = vmax.f32 %v1636_v21, 0.0 }
 0x187   : > { %v1226_v11 = vpop.f32.mrf.mxu1  ;;  %v1129_v18 = vpop.f32.mrf.mxu2 }
 0x188   : > { %v1669_v17 = vmax.f32 %v1605_v8, 0.0  ;;  %v1299_v33 = vadd.f32 %v1298_v1, %v1129_v18 }
 0x189   : > { %v1052_v19 = vpop.f32.mrf.mxu0 }
 0x18a   : > { %v2441_v20 = vpack.c.bf16 %v1669_v17, %v1668_v56  ;;  %v1569_v22 = vmul.f32 %v2812_v9, %v1299_v33  ;;  %v1222_v16 = vadd.f32 %v1221_v47, %v1052_v19 }
 0x18c   : > { %2545 = vst [vmem:[%s2843_s29 + $0x68] sm:$0xff] %v2441_v20   ;;  %v1637_v23 = vadd.f32 %v2820_v13, %v1569_v22  ;;  %v1538_v26 = vmul.f32 %v2812_v9, %v1222_v16 }
 0x18e   : > { %v1701_v27 = vmax.f32 %v1637_v23, 0.0  ;;  %v1606_v37 = vadd.f32 %v2820_v13, %v1538_v26 }
 0x18f   : > { %v1228_v24 = vpop.f32.mrf.mxu1  ;;  %v1132_v28 = vpop.f32.mrf.mxu2 }
 0x190   : > { %v2521_v29 = vpack.c.bf16 %v1701_v27, %v1700_v25  ;;  %v1302_v57 = vadd.f32 %v1301_v40, %v1132_v28  ;;  %v1670_v10 = vmax.f32 %v1606_v37, 0.0 }
 0x191   : > { %v1054_v30 = vpop.f32.mrf.mxu0 }
 0x192   : > { %v1224_v31 = vadd.f32 %v1223_v62, %v1054_v30  ;;  %2561 = vst [vmem:[%s2843_s29 + $0xe8] sm:$0xff] %v2521_v29   ;;  %v1570_v42 = vmul.f32 %v2812_v9, %v1302_v57 }
 0x194   : > { %v1539_v35 = vmul.f32 %v2812_v9, %v1224_v31  ;;  %v1638_v12 = vadd.f32 %v2820_v13, %v1570_v42 }
 0x196   : > { %v1607_v39 = vadd.f32 %v2820_v13, %v1539_v35 }
 0x197   : > { %v1231_v41 = vpop.f32.mrf.mxu1  ;;  %v1134_v38 = vpop.f32.mrf.mxu2 }
 0x198   : > { %v1671_v43 = vmax.f32 %v1607_v39, 0.0  ;;  %v1232_v44 = vadd.f32 %v1231_v41, %v2822_v14  ;;  %v1304_v45 = vadd.f32 %v1303_v32, %v1134_v38  ;;  %v1702_v14 = vmax.f32 %v1638_v12, 0.0 }
 0x199   : > { %v1057_v46 = vpop.f32.mrf.mxu0 }
 0x19a   : > { %v2446_v47 = vpack.c.bf16 %v1671_v43, %v1670_v10  ;;  %v1571_v48 = vmul.f32 %v2812_v9, %v1304_v45  ;;  %v1227_v49 = vadd.f32 %v1226_v11, %v1057_v46  ;;  %v1542_v0 = vmul.f32 %v2601_v50, %v1232_v44  ;;  %v2602_v9 = vld [vmem:[%s3102_s3] ss:$0 sm:$0xff]  ;;  %v1308_v11 = vpop.f32.mrf.mxu3 }
 0x19c   : > { %2546 = vst [vmem:[%s2843_s29 + $0x70] sm:$0xff] %v2446_v47   ;;  %v1639_v51 = vadd.f32 %v2820_v13, %v1571_v48  ;;  %v1540_v61 = vmul.f32 %v2601_v50, %v1227_v49  ;;  %v1610_v62 = vadd.f32 %v2602_v9, %v1542_v0 }
 0x19e   : > { %v1703_v58 = vmax.f32 %v1639_v51, 0.0  ;;  %v1608_v2 = vadd.f32 %v2602_v9, %v1540_v61  ;;  %v1674_v4 = vmax.f32 %v1610_v62, 0.0 }
 0x19f   : > { %v1233_v53 = vpop.f32.mrf.mxu1  ;;  %v1137_v54 = vpop.f32.mrf.mxu2 }
 0x1a0   : > { %v1234_v60 = vadd.f32 %v1233_v53, %v2838_v34  ;;  %v2526_v15 = vpack.c.bf16 %v1703_v58, %v1702_v14  ;;  %v1307_v1 = vadd.f32 %v1306_v52, %v1137_v54  ;;  %v1672_v8 = vmax.f32 %v1608_v2, 0.0 }
 0x1a1   : > { %v1059_v63 = vpop.f32.mrf.mxu0 }
 0x1a2   : > { %v1543_v55 = vmul.f32 %v2601_v50, %v1234_v60  ;;  %v1229_v59 = vadd.f32 %v1228_v24, %v1059_v63  ;;  %2562 = vst [vmem:[%s2843_s29 + $0xf0] sm:$0xff] %v2526_v15   ;;  %v1572_v7 = vmul.f32 %v2601_v50, %v1307_v1 }
 0x1a4   : > { %v1611_v13 = vadd.f32 %v2602_v9, %v1543_v55  ;;  %v1541_v3 = vmul.f32 %v2601_v50, %v1229_v59  ;;  %v1640_v33 = vadd.f32 %v2602_v9, %v1572_v7 }
 0x1a6   : > { %v1675_v34 = vmax.f32 %v1611_v13, 0.0  ;;  %v1609_v5 = vadd.f32 %v2602_v9, %v1541_v3  ;;  %v1704_v40 = vmax.f32 %v1640_v33, 0.0 }
 0x1a7   : > { %v1139_v56 = vpop.f32.mrf.mxu2 }
 0x1a8   : > { %v2456_v6 = vpack.c.bf16 %v1675_v34, %v1674_v4  ;;  %v1673_v36 = vmax.f32 %v1609_v5, 0.0  ;;  %v1309_v17 = vadd.f32 %v1308_v11, %v1139_v56 }
 0x1aa   : > { %2548 = vst [vmem:[%s2843_s29 + $0x80] sm:$0xff] %v2456_v6   ;;  %v2451_v18 = vpack.c.bf16 %v1673_v36, %v1672_v8  ;;  %v1573_v19 = vmul.f32 %v2601_v50, %v1309_v17 }
 0x1ac   : > { %2547 = vst [vmem:[%s2843_s29 + $0x78] sm:$0xff] %v2451_v18   ;;  %v1641_v20 = vadd.f32 %v2602_v9, %v1573_v19 }
 0x1ae   : > { %v1705_v21 = vmax.f32 %v1641_v20, 0.0 }
 0x1b0   : > { %v2531_v22 = vpack.c.bf16 %v1705_v21, %v1704_v40 }
 0x1b2   : > { %2563 = vst [vmem:[%s2843_s29 + $0xf8] sm:$0xff] %v2531_v22  }
 0x1b3 PF: > { %s14_s17 = sadd.s32 1, %s2625_s17   ;;  %s3104_s15 = smov %s2621_s16 }
 0x1b4   : > { %p11_p5 = scmp.ge.s32.totalorder %s14_s17, 6   ;;  %s3105_s16 = smov %s3107_s18 }
 0x1b6   :  { %13 = sbr.rel (!%p11_p5) target bundleno = 2 (0x2), region = 83 }

</bundles_post_ra>
